<compile_context>
chip_gen: v5e
topology: v5e:2x2
jax: 0.10.0
libtpu: 0.0.40
codegen_flags: <defaults>
</compile_context>

<pallas_src>
import functools

import jax
import jax.numpy as jnp
from jax import lax
from jax.experimental import pallas as pl
from jax.experimental.pallas import tpu as pltpu

LANE = 128


# ---------------------------------------------------------------------------
# Parameter preparation (done ONCE, not per step)
# ---------------------------------------------------------------------------
def init_params(key, input_dim, hidden_dim, output_dim):
    """PyTorch-layout parameters (W_ih [4H,D], W_hh [4H,H], W_out [O,H])."""
    ks = jax.random.split(key, 6)
    s = 1.0 / jnp.sqrt(hidden_dim)
    return {
        "w_ih": jax.random.uniform(ks[0], (4 * hidden_dim, input_dim),
                                   jnp.float32, -s, s),
        "w_hh": jax.random.uniform(ks[1], (4 * hidden_dim, hidden_dim),
                                   jnp.float32, -s, s),
        "b_ih": jax.random.uniform(ks[2], (4 * hidden_dim,), jnp.float32, -s, s),
        "b_hh": jax.random.uniform(ks[3], (4 * hidden_dim,), jnp.float32, -s, s),
        "w_out": jax.random.uniform(ks[4], (output_dim, hidden_dim),
                                    jnp.float32, -s, s),
        "b_out": jax.random.uniform(ks[5], (output_dim,), jnp.float32, -s, s),
    }


def _round_up(x, m):
    return (x + m - 1) // m * m


def prepare_params(params, compute_dtype=jnp.bfloat16):
    """Pre-transpose / pre-permute / pre-pad once so the kernel does no layout work.

    Returns:
      w_ih_t [D, 4H]    (compute_dtype)  W_ih^T, gate cols permuted [i,f,o,g]
      w_hh_t [H, 4H]    (compute_dtype)  W_hh^T, gate cols permuted [i,f,o,g]
      b      [1, 4H]    (f32)            (b_ih + b_hh), permuted [i,f,o,g]
      w_out  [H, Opad]  (compute_dtype)  W_out^T, zero-padded to 128-lane mult
      b_out  [1, Opad]  (f32)            zero-padded
    """
    four_h = params["w_ih"].shape[0]
    H = four_h // 4
    out_dim = params["w_out"].shape[0]
    o_pad = _round_up(out_dim, LANE)

    # PyTorch gate order is (i, f, g, o); reorder columns to (i, f, o, g) so
    # sigmoid / tanh each run over one contiguous slice in-kernel.
    perm = jnp.concatenate([
        jnp.arange(0, 2 * H),        # i, f
        jnp.arange(3 * H, 4 * H),    # o
        jnp.arange(2 * H, 3 * H),    # g
    ])

    w_ih_t = params["w_ih"].T[:, perm]
    w_hh_t = params["w_hh"].T[:, perm]
    b = (params["b_ih"] + params["b_hh"])[perm].reshape(1, four_h)

    w_out_t = jnp.pad(params["w_out"].T, ((0, 0), (0, o_pad - out_dim)))
    b_out = jnp.pad(params["b_out"], (0, o_pad - out_dim)).reshape(1, o_pad)

    return {
        "w_ih_t": w_ih_t.astype(compute_dtype),
        "w_hh_t": w_hh_t.astype(compute_dtype),
        "b": b.astype(jnp.float32),
        "w_out": w_out_t.astype(compute_dtype),
        "b_out": b_out.astype(jnp.float32),
    }


def _batch_block(batch):
    for bm in (256, 128, 64, 32, 16, 8):
        if batch % bm == 0:
            return bm
    return batch


@functools.lru_cache(maxsize=None)
def _vmem_limit_bytes():
    """Generation-aware VMEM budget: ~75% of physical, leaving Mosaic headroom."""
    try:
        cap = int(pltpu.get_tpu_info().vmem_capacity_bytes)
    except Exception:
        return 48 << 20          # conservative fallback (fits every generation)
    return min((cap * 3) // 4, 110 << 20)   # v7x: 48 MiB, v5e/v6e: 96 MiB


# ---------------------------------------------------------------------------
# Shared cell math (runs inside both kernels)
# ---------------------------------------------------------------------------
def _lstm_cell(x, h_f32, c_f32, wih_ref, whh_ref, b_ref, wout_ref, bout_ref):
    H = h_f32.shape[1]
    cdt = wih_ref.dtype                     # bf16 compute dtype for the MXU

    # Two MXU dots (no lane concat), f32 accumulation, fused bias.
    gates = (jnp.dot(x.astype(cdt), wih_ref[...],
                     preferred_element_type=jnp.float32)
             + jnp.dot(h_f32.astype(cdt), whh_ref[...],
                       preferred_element_type=jnp.float32)
             + b_ref[...])

    # Gate columns were permuted at prep time to [i, f, o, g]:
    # sigmoid over the first 3H columns, tanh over the last H only.
    sig = jax.nn.sigmoid(gates[:, :3 * H])
    g_g = jnp.tanh(gates[:, 3 * H:])
    i_g = sig[:, 0 * H:1 * H]
    f_g = sig[:, 1 * H:2 * H]
    o_g = sig[:, 2 * H:3 * H]

    c_new = f_g * c_f32 + i_g * g_g         # f32 state update
    h_new = o_g * jnp.tanh(c_new)

    out = jnp.tanh(
        jnp.dot(h_new.astype(cdt), wout_ref[...],
                preferred_element_type=jnp.float32)
        + bout_ref[...])
    return out, h_new, c_new


# ---------------------------------------------------------------------------
# Single-step kernel (matches BasicRNN.forward exactly)
# ---------------------------------------------------------------------------
def lstm_step_kernel(x_ref, h_ref, c_ref, wih_ref, whh_ref, b_ref, wout_ref,
                     bout_ref, out_ref, h_out_ref, c_out_ref):
    out, h_new, c_new = _lstm_cell(
        x_ref[...],
        h_ref[...].astype(jnp.float32),
        c_ref[...].astype(jnp.float32),
        wih_ref, whh_ref, b_ref, wout_ref, bout_ref)
    out_ref[...] = out.astype(out_ref.dtype)
    h_out_ref[...] = h_new                  # state stays f32 (no truncation)
    c_out_ref[...] = c_new


@functools.partial(jax.jit, static_argnames=("out_dim",))
def basic_rnn_forward(x, state, prepped, *, out_dim):
    """One BasicRNN step. x: [B, D]; state: (h, c) each [B, H]."""
    h, c = state
    B, D = x.shape
    H = h.shape[1]
    Op = prepped["w_out"].shape[1]          # lane-padded output width
    bm = _batch_block(B)

    batched = lambda i: (i, 0)
    const = lambda i: (0, 0)
    buf1 = pl.Buffered(1)                   # constant-index blocks: single-buffer

    # TODO(synk): for very large H where bf16 weights approach ~1/3 of VMEM,
    # tile the 4H gate dimension across an extra grid axis so weights stream
    # instead of fully residing (needed for v7x's 64 MiB/TC).
    out, h_new, c_new = pl.pallas_call(
        lstm_step_kernel,
        out_shape=(
            jax.ShapeDtypeStruct((B, Op), x.dtype),
            jax.ShapeDtypeStruct((B, H), jnp.float32),
            jax.ShapeDtypeStruct((B, H), jnp.float32),
        ),
        grid=(B // bm,),
        in_specs=[
            pl.BlockSpec((bm, D), batched),
            pl.BlockSpec((bm, H), batched),
            pl.BlockSpec((bm, H), batched),
            pl.BlockSpec((D, 4 * H), const, pipeline_mode=buf1),
            pl.BlockSpec((H, 4 * H), const, pipeline_mode=buf1),
            pl.BlockSpec((1, 4 * H), const, pipeline_mode=buf1),
            pl.BlockSpec((H, Op), const, pipeline_mode=buf1),
            pl.BlockSpec((1, Op), const, pipeline_mode=buf1),
        ],
        out_specs=(
            pl.BlockSpec((bm, Op), batched),
            pl.BlockSpec((bm, H), batched),
            pl.BlockSpec((bm, H), batched),
        ),
        compiler_params=pltpu.CompilerParams(
            dimension_semantics=("parallel",),   # batch shards over 2 TCs on v7x
            vmem_limit_bytes=_vmem_limit_bytes()),
    )(x, h, c, prepped["w_ih_t"], prepped["w_hh_t"], prepped["b"],
      prepped["w_out"], prepped["b_out"])

    return out[:, :out_dim], (h_new, c_new)


# ---------------------------------------------------------------------------
# Sequence kernel: time chunked inside the kernel, parallel batch grid axis,
# weights resident in VMEM (single-buffered), f32 h/c carried in scratch.
# ---------------------------------------------------------------------------
def lstm_seq_kernel(x_ref, h0_ref, c0_ref, wih_ref, whh_ref, b_ref, wout_ref,
                    bout_ref, out_ref, hT_ref, cT_ref, h_scr, c_scr):
    tchunk = pl.program_id(1)

    @pl.when(tchunk == 0)
    def _():
        h_scr[...] = h0_ref[...].astype(jnp.float32)
        c_scr[...] = c0_ref[...].astype(jnp.float32)

    tc_steps = x_ref.shape[0]               # static chunk length

    def step(t, carry):
        out, h_new, c_new = _lstm_cell(
            x_ref[t], h_scr[...], c_scr[...],
            wih_ref, whh_ref, b_ref, wout_ref, bout_ref)
        h_scr[...] = h_new                  # f32 carry (no per-step cast drift)
        c_scr[...] = c_new
        out_ref[t] = out.astype(out_ref.dtype)
        return carry

    lax.fori_loop(0, tc_steps, step, 0, unroll=True)

    # Final state written only once, on the last time chunk.
    @pl.when(tchunk == pl.num_programs(1) - 1)
    def _():
        hT_ref[...] = h_scr[...]
        cT_ref[...] = c_scr[...]


@functools.partial(jax.jit, static_argnames=("out_dim", "time_chunk"))
def basic_rnn_sequence(x_seq, state, prepped, *, out_dim, time_chunk=8):
    """Iterate the cell over a sequence. x_seq: [T, B, D] -> ([T, B, O], (h_T, c_T))."""
    T, B, D = x_seq.shape
    h0, c0 = state
    H = h0.shape[1]
    Op = prepped["w_out"].shape[1]
    bm = _batch_block(B)

    # Largest chunk <= time_chunk that divides T (amortizes per-grid-step overhead).
    Tc = max(1, min(time_chunk, T))
    while T % Tc:
        Tc -= 1

    x_map = lambda b, t: (t, b, 0)
    state_map = lambda b, t: (b, 0)
    const = lambda b, t: (0, 0)
    buf1 = pl.Buffered(1)

    out_seq, hT, cT = pl.pallas_call(
        lstm_seq_kernel,
        out_shape=(
            jax.ShapeDtypeStruct((T, B, Op), x_seq.dtype),
            jax.ShapeDtypeStruct((B, H), jnp.float32),
            jax.ShapeDtypeStruct((B, H), jnp.float32),
        ),
        grid=(B // bm, T // Tc),
        in_specs=[
            pl.BlockSpec((Tc, bm, D), x_map),
            pl.BlockSpec((bm, H), state_map, pipeline_mode=buf1),
            pl.BlockSpec((bm, H), state_map, pipeline_mode=buf1),
            # constant block index -> weights DMA'd once, resident in VMEM,
            # single-buffered so the footprint is 1x (not 2x) the weight size.
            pl.BlockSpec((D, 4 * H), const, pipeline_mode=buf1),
            pl.BlockSpec((H, 4 * H), const, pipeline_mode=buf1),
            pl.BlockSpec((1, 4 * H), const, pipeline_mode=buf1),
            pl.BlockSpec((H, Op), const, pipeline_mode=buf1),
            pl.BlockSpec((1, Op), const, pipeline_mode=buf1),
        ],
        out_specs=(
            pl.BlockSpec((Tc, bm, Op), x_map),
            pl.BlockSpec((bm, H), state_map),
            pl.BlockSpec((bm, H), state_map),
        ),
        scratch_shapes=[
            pltpu.VMEM((bm, H), jnp.float32),     # h carry
            pltpu.VMEM((bm, H), jnp.float32),     # c carry
        ],
        compiler_params=pltpu.CompilerParams(
            # batch is independent (shards over TCs); time is a true recurrence
            dimension_semantics=("parallel", "arbitrary"),
            vmem_limit_bytes=_vmem_limit_bytes()),
    )(x_seq, h0, c0, prepped["w_ih_t"], prepped["w_hh_t"], prepped["b"],
      prepped["w_out"], prepped["b_out"])

    return out_seq[:, :, :out_dim], (hT, cT)


# ---------------------------------------------------------------------------
# Pure-JAX reference (f32, PyTorch semantics)
# ---------------------------------------------------------------------------
def reference_forward(x, state, p):
    h, c = state
    gates = x @ p["w_ih"].T + p["b_ih"] + h @ p["w_hh"].T + p["b_hh"]
    H = h.shape[1]
    i = jax.nn.sigmoid(gates[:, :H])
    f = jax.nn.sigmoid(gates[:, H:2 * H])
    g = jnp.tanh(gates[:, 2 * H:3 * H])
    o = jax.nn.sigmoid(gates[:, 3 * H:])
    c_new = f * c + i * g
    h_new = o * jnp.tanh(c_new)
    out = jnp.tanh(h_new @ p["w_out"].T + p["b_out"])
    return out, (h_new, c_new)


if __name__ == "__main__":
    B, D, H, O, T = 8, 16, 32, 8, 8   # batch, input_dim, hidden_dim, output_dim, seq_len

    key = jax.random.PRNGKey(0)
    kx, kp, ks = jax.random.split(key, 3)
    x = jax.random.normal(kx, (B, D), jnp.float32)
    params = init_params(kp, D, H, O)
    prepped = prepare_params(params, compute_dtype=jnp.bfloat16)

    # zero_state=False path: initial_h / initial_c are zero-initialized params.
    h0 = jnp.zeros((B, H), jnp.float32)
    c0 = jnp.zeros((B, H), jnp.float32)

    # --- single step (matches BasicRNN.forward) ---
    out, (h1, c1) = basic_rnn_forward(x, (h0, c0), prepped, out_dim=O)
    jax.block_until_ready((out, h1, c1))

    r_out, (r_h, r_c) = reference_forward(x, (h0, c0), params)
    assert out.shape == (B, O)
    # bf16 matmul operands with f32 accumulate -> looser tolerance than pure f32
    assert jnp.allclose(out, r_out, atol=2e-2), "output mismatch"
    assert jnp.allclose(h1, r_h, atol=2e-2), "hidden mismatch"
    assert jnp.allclose(c1, r_c, atol=2e-2), "cell mismatch"

    # --- in-kernel chunked time loop over a sequence ---
    x_seq = jax.random.normal(ks, (T, B, D), jnp.float32)
    seq_out, (hT, cT) = basic_rnn_sequence(x_seq, (h0, c0), prepped,
                                           out_dim=O, time_chunk=4)
    jax.block_until_ready((seq_out, hT, cT))

    def scan_ref(carry, xt):
        o, new_state = reference_forward(xt, carry, params)
        return new_state, o

    (rhT, rcT), r_seq = jax.lax.scan(scan_ref, (h0, c0), x_seq)
    assert seq_out.shape == (T, B, O)
    assert jnp.allclose(seq_out, r_seq, atol=6e-2), "sequence output mismatch"
    assert jnp.allclose(hT, rhT, atol=6e-2), "final hidden mismatch"
    assert jnp.allclose(cT, rcT, atol=6e-2), "final cell mismatch"

    print("KERNEL_OK")
</pallas_src>

<mosaic_0001>
module attributes {stable_mosaic.version = 11 : i64} {
  func.func @lstm_step_kernel(%arg0: i32, %arg1: memref<8x16xf32, #tpu.memory_space<vmem>>, %arg2: memref<8x32xf32, #tpu.memory_space<vmem>>, %arg3: memref<8x32xf32, #tpu.memory_space<vmem>>, %arg4: memref<16x128xbf16, #tpu.memory_space<vmem>>, %arg5: memref<32x128xbf16, #tpu.memory_space<vmem>>, %arg6: memref<1x128xf32, #tpu.memory_space<vmem>>, %arg7: memref<32x128xbf16, #tpu.memory_space<vmem>>, %arg8: memref<1x128xf32, #tpu.memory_space<vmem>>, %arg9: memref<8x128xf32, #tpu.memory_space<vmem>>, %arg10: memref<8x32xf32, #tpu.memory_space<vmem>>, %arg11: memref<8x32xf32, #tpu.memory_space<vmem>>) attributes {dimension_semantics = [#tpu.dimension_semantics<parallel>], iteration_bounds = array<i64: 1>, scalar_prefetch = 0 : i64, scratch_operands = 0 : i64, tpu.core_type = #tpu.core_type<tc>, window_params = [{transform_indices = @transform_0, window_bounds = array<i64: 8, 16>}, {transform_indices = @transform_1, window_bounds = array<i64: 8, 32>}, {transform_indices = @transform_2, window_bounds = array<i64: 8, 32>}, {pipeline_mode = #tpu.pipeline_mode<synchronous>, transform_indices = @transform_3, window_bounds = array<i64: 16, 128>}, {pipeline_mode = #tpu.pipeline_mode<synchronous>, transform_indices = @transform_4, window_bounds = array<i64: 32, 128>}, {pipeline_mode = #tpu.pipeline_mode<synchronous>, transform_indices = @transform_5, window_bounds = array<i64: 1, 128>}, {pipeline_mode = #tpu.pipeline_mode<synchronous>, transform_indices = @transform_6, window_bounds = array<i64: 32, 128>}, {pipeline_mode = #tpu.pipeline_mode<synchronous>, transform_indices = @transform_7, window_bounds = array<i64: 1, 128>}, {transform_indices = @transform_8, window_bounds = array<i64: 8, 128>}, {transform_indices = @transform_9, window_bounds = array<i64: 8, 32>}, {transform_indices = @transform_10, window_bounds = array<i64: 8, 32>}]} {
    %c0 = arith.constant 0 : index
    %c0_0 = arith.constant 0 : index
    %0 = vector.load %arg1[%c0, %c0_0] : memref<8x16xf32, #tpu.memory_space<vmem>>, vector<8x16xf32>
    %c0_1 = arith.constant 0 : index
    %c0_2 = arith.constant 0 : index
    %1 = vector.load %arg2[%c0_1, %c0_2] : memref<8x32xf32, #tpu.memory_space<vmem>>, vector<8x32xf32>
    %c0_3 = arith.constant 0 : index
    %c0_4 = arith.constant 0 : index
    %2 = vector.load %arg3[%c0_3, %c0_4] : memref<8x32xf32, #tpu.memory_space<vmem>>, vector<8x32xf32>
    %3 = arith.truncf %0 : vector<8x16xf32> to vector<8x16xbf16>
    %c0_5 = arith.constant 0 : index
    %c0_6 = arith.constant 0 : index
    %4 = vector.load %arg4[%c0_5, %c0_6] : memref<16x128xbf16, #tpu.memory_space<vmem>>, vector<16x128xbf16>
    %cst = arith.constant dense<0.000000e+00> : vector<8x128xf32>
    %5 = tpu.matmul %3, %4, %cst {dimension_numbers = #tpu.dot_dimension_numbers<[1], [0], [0], [1], [0, 0, 1, 1], [], []>} : vector<8x16xbf16>, vector<16x128xbf16>, vector<8x128xf32> -> vector<8x128xf32>
    %6 = arith.truncf %1 : vector<8x32xf32> to vector<8x32xbf16>
    %c0_7 = arith.constant 0 : index
    %c0_8 = arith.constant 0 : index
    %7 = vector.load %arg5[%c0_7, %c0_8] : memref<32x128xbf16, #tpu.memory_space<vmem>>, vector<32x128xbf16>
    %cst_9 = arith.constant dense<0.000000e+00> : vector<8x128xf32>
    %8 = tpu.matmul %6, %7, %cst_9 {dimension_numbers = #tpu.dot_dimension_numbers<[1], [0], [0], [1], [0, 0, 1, 1], [], []>} : vector<8x32xbf16>, vector<32x128xbf16>, vector<8x128xf32> -> vector<8x128xf32>
    %9 = arith.addf %5, %8 : vector<8x128xf32>
    %c0_10 = arith.constant 0 : index
    %c0_11 = arith.constant 0 : index
    %10 = vector.load %arg6[%c0_10, %c0_11] : memref<1x128xf32, #tpu.memory_space<vmem>>, vector<1x128xf32>
    %11 = vector.broadcast %10 : vector<1x128xf32> to vector<8x128xf32>
    %12 = arith.addf %9, %11 : vector<8x128xf32>
    %13 = vector.extract_strided_slice %12 {offsets = [0, 0], sizes = [8, 96], strides = [1, 1]} : vector<8x128xf32> to vector<8x96xf32>
    %14 = arith.negf %13 : vector<8x96xf32>
    %15 = math.exp %14 : vector<8x96xf32>
    %cst_12 = arith.constant 1.000000e+00 : f32
    %16 = vector.broadcast %cst_12 : f32 to vector<8x96xf32>
    %17 = arith.addf %16, %15 : vector<8x96xf32>
    %18 = arith.divf %16, %17 : vector<8x96xf32>
    %19 = vector.extract_strided_slice %12 {offsets = [0, 96], sizes = [8, 32], strides = [1, 1]} : vector<8x128xf32> to vector<8x32xf32>
    %20 = math.tanh %19 : vector<8x32xf32>
    %21 = vector.extract_strided_slice %18 {offsets = [0, 0], sizes = [8, 32], strides = [1, 1]} : vector<8x96xf32> to vector<8x32xf32>
    %22 = vector.extract_strided_slice %18 {offsets = [0, 32], sizes = [8, 32], strides = [1, 1]} : vector<8x96xf32> to vector<8x32xf32>
    %23 = vector.extract_strided_slice %18 {offsets = [0, 64], sizes = [8, 32], strides = [1, 1]} : vector<8x96xf32> to vector<8x32xf32>
    %24 = arith.mulf %22, %2 : vector<8x32xf32>
    %25 = arith.mulf %21, %20 : vector<8x32xf32>
    %26 = arith.addf %24, %25 : vector<8x32xf32>
    %27 = math.tanh %26 : vector<8x32xf32>
    %28 = arith.mulf %23, %27 : vector<8x32xf32>
    %29 = arith.truncf %28 : vector<8x32xf32> to vector<8x32xbf16>
    %c0_13 = arith.constant 0 : index
    %c0_14 = arith.constant 0 : index
    %30 = vector.load %arg7[%c0_13, %c0_14] : memref<32x128xbf16, #tpu.memory_space<vmem>>, vector<32x128xbf16>
    %cst_15 = arith.constant dense<0.000000e+00> : vector<8x128xf32>
    %31 = tpu.matmul %29, %30, %cst_15 {dimension_numbers = #tpu.dot_dimension_numbers<[1], [0], [0], [1], [0, 0, 1, 1], [], []>} : vector<8x32xbf16>, vector<32x128xbf16>, vector<8x128xf32> -> vector<8x128xf32>
    %c0_16 = arith.constant 0 : index
    %c0_17 = arith.constant 0 : index
    %32 = vector.load %arg8[%c0_16, %c0_17] : memref<1x128xf32, #tpu.memory_space<vmem>>, vector<1x128xf32>
    %33 = vector.broadcast %32 : vector<1x128xf32> to vector<8x128xf32>
    %34 = arith.addf %31, %33 : vector<8x128xf32>
    %35 = math.tanh %34 : vector<8x128xf32>
    %c0_18 = arith.constant 0 : index
    %c0_19 = arith.constant 0 : index
    %36 = vector.load %arg9[%c0_18, %c0_19] : memref<8x128xf32, #tpu.memory_space<vmem>>, vector<8x128xf32>
    tpu.vector_store %arg9[%c0_18, %c0_19], %35 {strides = array<i32>} : memref<8x128xf32, #tpu.memory_space<vmem>>, vector<8x128xf32>,
    %c0_20 = arith.constant 0 : index
    %c0_21 = arith.constant 0 : index
    %37 = vector.load %arg10[%c0_20, %c0_21] : memref<8x32xf32, #tpu.memory_space<vmem>>, vector<8x32xf32>
    tpu.vector_store %arg10[%c0_20, %c0_21], %28 {strides = array<i32>} : memref<8x32xf32, #tpu.memory_space<vmem>>, vector<8x32xf32>,
    %c0_22 = arith.constant 0 : index
    %c0_23 = arith.constant 0 : index
    %38 = vector.load %arg11[%c0_22, %c0_23] : memref<8x32xf32, #tpu.memory_space<vmem>>, vector<8x32xf32>
    tpu.vector_store %arg11[%c0_22, %c0_23], %26 {strides = array<i32>} : memref<8x32xf32, #tpu.memory_space<vmem>>, vector<8x32xf32>,
    return
  }
  func.func @transform_0(%arg0: i32) -> (i32, i32) {
    %c0_i32 = arith.constant 0 : i32
    %c0_i32_0 = arith.constant 0 : i32
    return %arg0, %c0_i32 : i32, i32
  }
  func.func @transform_1(%arg0: i32) -> (i32, i32) {
    %c0_i32 = arith.constant 0 : i32
    %c0_i32_0 = arith.constant 0 : i32
    return %arg0, %c0_i32 : i32, i32
  }
  func.func @transform_2(%arg0: i32) -> (i32, i32) {
    %c0_i32 = arith.constant 0 : i32
    %c0_i32_0 = arith.constant 0 : i32
    return %arg0, %c0_i32 : i32, i32
  }
  func.func @transform_3(%arg0: i32) -> (i32, i32) {
    %c0_i32 = arith.constant 0 : i32
    %c0_i32_0 = arith.constant 0 : i32
    %c0_i32_1 = arith.constant 0 : i32
    return %c0_i32, %c0_i32_0 : i32, i32
  }
  func.func @transform_4(%arg0: i32) -> (i32, i32) {
    %c0_i32 = arith.constant 0 : i32
    %c0_i32_0 = arith.constant 0 : i32
    %c0_i32_1 = arith.constant 0 : i32
    return %c0_i32, %c0_i32_0 : i32, i32
  }
  func.func @transform_5(%arg0: i32) -> (i32, i32) {
    %c0_i32 = arith.constant 0 : i32
    %c0_i32_0 = arith.constant 0 : i32
    %c0_i32_1 = arith.constant 0 : i32
    return %c0_i32, %c0_i32_0 : i32, i32
  }
  func.func @transform_6(%arg0: i32) -> (i32, i32) {
    %c0_i32 = arith.constant 0 : i32
    %c0_i32_0 = arith.constant 0 : i32
    %c0_i32_1 = arith.constant 0 : i32
    return %c0_i32, %c0_i32_0 : i32, i32
  }
  func.func @transform_7(%arg0: i32) -> (i32, i32) {
    %c0_i32 = arith.constant 0 : i32
    %c0_i32_0 = arith.constant 0 : i32
    %c0_i32_1 = arith.constant 0 : i32
    return %c0_i32, %c0_i32_0 : i32, i32
  }
  func.func @transform_8(%arg0: i32) -> (i32, i32) {
    %c0_i32 = arith.constant 0 : i32
    %c0_i32_0 = arith.constant 0 : i32
    return %arg0, %c0_i32 : i32, i32
  }
  func.func @transform_9(%arg0: i32) -> (i32, i32) {
    %c0_i32 = arith.constant 0 : i32
    %c0_i32_0 = arith.constant 0 : i32
    return %arg0, %c0_i32 : i32, i32
  }
  func.func @transform_10(%arg0: i32) -> (i32, i32) {
    %c0_i32 = arith.constant 0 : i32
    %c0_i32_0 = arith.constant 0 : i32
    return %arg0, %c0_i32 : i32, i32
  }
}

</mosaic_0001>

<bundles_post_ra>
// kernel: basic_rnn_forward.1
= control target key start
LH: loop header
LB: loop body
LE: loop exit
PB: predicated region body
PF: predicated region fallthrough
CT: control target
= control target key end

     0   :  { %16 = vsyncpa [#allocation3], 0  ;;  %s734_s0 = inlined_call_operand.hbm [shape: f32[8,16], index: 0, kind: input, shape index: {}]   ;;  %s735_s1 = inlined_call_operand.hbm [shape: f32[8,32], index: 1, kind: input, shape index: {}]   ;;  %s736_s2 = inlined_call_operand.hbm [shape: f32[8,32], index: 2, kind: input, shape index: {}]   ;;  %s737_s3 = inlined_call_operand.hbm [shape: bf16[16,128], index: 3, kind: input, shape index: {}]   ;;  %s738_s4 = inlined_call_operand.hbm [shape: bf16[32,128], index: 4, kind: input, shape index: {}]   ;;  %s739_s5 = inlined_call_operand.vmem [shape: f32[1,128], index: 5, kind: input, shape index: {}]   ;;  %s740_s6 = inlined_call_operand.hbm [shape: bf16[32,128], index: 6, kind: input, shape index: {}]   ;;  %s741_s7 = inlined_call_operand.vmem [shape: f32[1,128], index: 7, kind: input, shape index: {}]   ;;  %s742_s8 = inlined_call_operand.hbm [shape: f32[8,128], index: 8, kind: output, shape index: {0}]   ;;  %s743_s9 = inlined_call_operand.hbm [shape: f32[8,32], index: 9, kind: output, shape index: {1}]   ;;  %s744_s10 = inlined_call_operand.hbm [shape: f32[8,32], index: 10, kind: output, shape index: {2}]  }
   0x1   :  { %17 = vsyncpa [#allocation6], 0 }
   0x2   :  { %18 = vsyncpa [#allocation9], 0 }
   0x3   :  { %19 = vsyncpa [#allocation12], 0 }
   0x4   :  { %20 = vsyncpa [#allocation4], 0  ;;  %s38_s15 = sshll.u32 %s735_s1, 4  ;;  %s39_s15 = int_to_ptr.hbm [resolvable:$true] %s38_s15 }
   0x5   :  { %21 = vsyncpa [#allocation15], 0  ;;  %s617_s16 = smov [#allocation5]   ;;  %s59_s20 = sshll.u32 %s737_s3, 4  ;;  %s60_s20 = int_to_ptr.hbm [resolvable:$true] %s59_s20 }
   0x6   :  { %s40_s17 = sshll.u32 %s617_s16, 4  ;;  %s618_s21 = smov [#allocation8]   ;;  %s41_s17 = int_to_ptr.vmem [resolvable:$true] %s40_s17 }
   0x7   :  { %43 = dma.hbm_to_vmem [thread:$0]  %s39_s15, 128, %s41_s17, [#allocation6]  }
   0x8   :  { %s61_s22 = sshll.u32 %s618_s21, 4  ;;  %s619_s23 = smov 64   ;;  %s62_s22 = int_to_ptr.vmem [resolvable:$true] %s61_s22 }
   0x9   :  { %s620_s24 = smov 4   ;;  %s27_s26 = sshll.u32 %s734_s0, 4  ;;  %s28_s26 = int_to_ptr.hbm [resolvable:$true] %s27_s26 }
   0xa   :  { %67 = dma.hbm_to_vmem [thread:$0]  %s60_s20, 128, %s62_s22, [#allocation9], %s619_s23, %s619_s23, %s620_s24  }
   0xb   :  { %s621_s27 = smov [#allocation2]   ;;  %s49_s30 = sshll.u32 %s736_s2, 4  ;;  %s50_s30 = int_to_ptr.hbm [resolvable:$true] %s49_s30 }
   0xc   :  { %s29_s28 = sshll.u32 %s621_s27, 4  ;;  %s622_s11 = smov [#allocation7]   ;;  %s30_s28 = int_to_ptr.vmem [resolvable:$true] %s29_s28 }
   0xd   :  { %32 = dma.hbm_to_vmem [thread:$0]  %s28_s26, 128, %s30_s28, [#allocation3]  }
   0xe   :  { %s51_s12 = sshll.u32 %s622_s11, 4  ;;  %s72_s15 = sshll.u32 %s738_s4, 4  ;;  %s52_s12 = int_to_ptr.vmem [resolvable:$true] %s51_s12  ;;  %s73_s15 = int_to_ptr.hbm [resolvable:$true] %s72_s15 }
   0xf   :  { %54 = dma.hbm_to_vmem [thread:$0]  %s50_s30, 128, %s52_s12, [#allocation6]  }
  0x10   :  { %s87_s17 = sshll.u32 %s740_s6, 4  ;;  %s623_s18 = smov [#allocation10]   ;;  %s88_s17 = int_to_ptr.hbm [resolvable:$true] %s87_s17 }
  0x11   :  { %s74_s19 = sshll.u32 %s623_s18, 4  ;;  %s624_s2 = smov [#allocation11]   ;;  %s75_s19 = int_to_ptr.vmem [resolvable:$true] %s74_s19 }
  0x12   :  { %80 = dma.hbm_to_vmem [thread:$0]  %s73_s15, 256, %s75_s19, [#allocation9], %s619_s23, %s619_s23, %s620_s24  }
  0x13   :  { %s89_s20 = sshll.u32 %s624_s2, 4  ;;  %s90_s20 = int_to_ptr.vmem [resolvable:$true] %s89_s20 }
  0x14   :  { %95 = dma.hbm_to_vmem [thread:$0]  %s88_s17, 256, %s90_s20, [#allocation12], %s619_s23, %s619_s23, %s620_s24  }
  0x15   :  { %605 = dma.done.wait [#allocation3], 128  }
  0x16   :  { %606 = vsyncadd [#allocation3], 4294967168 }
  0x17   :  { %607 = dma.done.wait [#allocation6], 256  }
  0x18   :  { %608 = vsyncadd [#allocation6], 4294967040 }
  0x19   :  { %609 = dma.done.wait [#allocation9], 384  }
  0x1a   :  { %610 = vsyncadd [#allocation9], 4294966912 }
  0x1b   :  { %611 = dma.done.wait [#allocation12], 256  }
  0x1c   :  { %612 = vsyncadd [#allocation12], 4294967040  ;;  %v361_v0 = vld [vmem:[#allocation10 + $0x8] sm:$0xff]  ;;  %v359_v1 = vld [vmem:[#allocation8] sm:$0xff]  ;;  %vm169_vm0 = vcmask 130048   ;;  %vm146_vm1 = vcmask 261120  }
  0x1d   :  { %v123_v2 = vld [vmem:[#allocation2] sm:$0xff]  ;;  %156 = vmatpush.bf16.msra.mxu0 %v361_v0  ;;  %180 = vmatpush.bf16.msra.mxu1 %v359_v1  ;;  %v124_v5 = vld [vmem:[#allocation5] sm:$0xff]  ;;  %s625_s21 = smov 32   ;;  %v125_v15 = vld [vmem:[#allocation7] sm:$0xff]  ;;  %s627_s22 = smov [#allocation14]  }
  0x1e   :  { %v126_v3 = vpack.c.bf16 %v123_v2, %v123_v2  ;;  %v360_v4 = vld [vmem:[#allocation10] sm:$0xff]  ;;  %v129_v6 = vpack.c.bf16 %v124_v5, %v124_v5  ;;  %v363_v36 = vld [vmem:[#allocation11 + $0x8] sm:$0xff]  ;;  %v362_v37 = vld [vmem:[#allocation11] sm:$0xff]  ;;  %s300_s24 = sshll.u32 %s627_s22, 4  ;;  %s302_s26 = sshll.u32 %s743_s9, 4  ;;  %s301_s24 = int_to_ptr.vmem [resolvable:$true] %s300_s24  ;;  %s303_s26 = int_to_ptr.hbm [resolvable:$true] %s302_s26 }
  0x1f   :  { %v377_v8 = vld [vmem:[%s739_s5] ss:$0 sm:$0xff]  ;;  %s626_s5 = smov 96   ;;  %265 = vmatpush.bf16.msra.mxu2 %v363_v36  ;;  %s628_s27 = smov [#allocation16]  }
  0x20   :  { %348 = vmatmul.msk.bf16.vlgmr.msra.gmra.mxu1 %vm169_vm0, %v126_v3  ;;  %s311_s28 = sshll.u32 %s628_s27, 4  ;;  %v378_v44 = vld [vmem:[%s741_s7] ss:$0 sm:$0xff]  ;;  %s629_s9 = smov [#allocation13]   ;;  %s312_s28 = int_to_ptr.vmem [resolvable:$true] %s311_s28 }
  0x21   :  { %157 = vmatpush.bf16.msra.mxu0 %v360_v4  ;;  %s289_s12 = sshll.u32 %s629_s9, 4  ;;  %s291_s15 = sshll.u32 %s742_s8, 4  ;;  %s290_s12 = int_to_ptr.vmem [resolvable:$true] %s289_s12  ;;  %s292_s15 = int_to_ptr.hbm [resolvable:$true] %s291_s15 }
  0x23   :  { %266 = vmatpush.bf16.msra.mxu2 %v362_v37 }
  0x24   :  { %343 = vmatmul.msk.bf16.vlgmr.msra.gmra.mxu0 %vm146_vm1, %v129_v6 }
  0x9d   :  { %v182_v7 = vpop.f32.mrf.mxu1 }
  0xa1   :  { %v159_v9 = vpop.f32.mrf.mxu0 }
  0xa2   :  { %v183_v10 = vadd.f32 %v182_v7, %v159_v9 }
  0xa4   :  { %v190_v11 = vadd.f32 %v377_v8, %v183_v10 }
  0xa5   :  { %v184_v12 = vpop.f32.mrf.mxu1 }
  0xa6   :  { %379 = vtanh.f32 %v190_v11  ;;  %v349_v16 = vmul.f32 -1.442695, %v190_v11 }
  0xa8   :  { %381 = vpow2.f32 %v349_v16 }
  0xa9   :  { %v161_v13 = vpop.f32.mrf.mxu0 }
  0xac   :  { %v380_v14 = vpop.eup %379 }
  0xad   :  { %217 = vrot.lane.b32.xlu0 %v380_v14, %s625_s21 }
  0xae   :  { %v382_v17 = vpop.eup %381 }
  0xaf   :  { %v194_v18 = vadd.f32 1.0, %v382_v17 }
  0xb1   :  { %383 = vrcp.f32 %v194_v18  ;;  %v206_v24 = vand.u32 2147483648, %v194_v18  ;;  %vm200_vm3 = vweird.f32 %v194_v18  ;;  %v204_v25 = vand.u32 2147483647, %v194_v18 }
  0xb3   :  { %v207_v27 = vor.u32 1.1754944e-38, %v206_v24  ;;  %vm205_vm5 = vcmp.eq.f32.partialorder %v204_v25, 8.507059e+37 }
  0xb5   :  { %212 = vrot.lane.b32.xlu0 %v125_v15, %s625_s21 }
  0xb7   :  { %v384_v19 = vpop.eup %383 }
  0xb8   :  { %v196_v20 = vmul.f32 %v384_v19, %v194_v18  ;;  %vm201_vm2 = vweird.f32 %v384_v19 }
  0xb9   :  { %vm202_vm4 = vmor %vm200_vm3, %vm201_vm2 }
  0xba   :  { %v197_v21 = vsub.f32 1.0, %v196_v20 }
  0xbc   :  { %v198_v22 = vmul.f32 %v384_v19, %v197_v21 }
  0xbe   :  { %v199_v23 = vadd.f32 %v384_v19, %v198_v22 }
  0xc0   :  { %v203_v26 = vsel %vm202_vm4, %v384_v19, %v199_v23 }
  0xc1   :  { %v208_v29 = vsel %vm205_vm5, %v207_v27, %v203_v26 }
 0x11f   :  { %v218_v28 = vpop.permute.xlu0 %217 }
 0x120   :  { %v220_v30 = vmul.f32 %v218_v28, %v208_v29 }
 0x122   :  { %222 = vrot.lane.b32.xlu1 %v220_v30, %s625_s21 }
 0x127   :  { %v213_v31 = vpop.permute.xlu0 %212 }
 0x128   :  { %v215_v32 = vmul.f32 %v213_v31, %v208_v29 }
 0x194   :  { %v223_v33 = vpop.permute.xlu1 %222 }
 0x195   :  { %v225_v34 = vadd.f32 %v223_v33, %v215_v32 }
 0x197   :  { %385 = vtanh.f32 %v225_v34  ;;  %280 = vrot.lane.b32.xlu0 %v225_v34, %s626_s5 }
 0x19d   :  { %v386_v35 = vpop.eup %385 }
 0x19e   :  { %228 = vrot.lane.b32.xlu1 %v386_v35, %s625_s21 }
 0x209   :  { %v281_v38 = vpop.permute.xlu0 %280 }
 0x20a   :  { %283 = vst.msk [vmem:[#allocation16] sm:$0xff] %vm146_vm1, %v281_v38 }
 0x210   :  { %v229_v39 = vpop.permute.xlu1 %228 }
 0x211   :  { %v231_v40 = vmul.f32 %v229_v39, %v208_v29 }
 0x213   :  { %v232_v41 = vpack.c.bf16 %v231_v40, %v231_v40 }
 0x215   :  { %242 = vrot.lane.b32.xlu2 %v232_v41, %s619_s23 }
 0x21d   :  { %275 = vrot.lane.b32.xlu2 %v231_v40, %s619_s23  ;;  %s313_s23 = sshll.u32 %s744_s10, 4  ;;  %s314_s23 = int_to_ptr.hbm [resolvable:$true] %s313_s23 }
 0x26f   :  { %v243_v42 = vpop.permute.xlu2 %242 }
 0x270   :  { %358 = vmatmul.msk.bf16.vlgmr.msra.gmra.mxu2 %vm146_vm1, %v243_v42 }
 0x277   :  { %v276_v43 = vpop.permute.xlu2 %275 }
 0x278   :  { %278 = vst.msk [vmem:[#allocation14] sm:$0xff] %vm146_vm1, %v276_v43 }
 0x279   :  { %305 = dma.vmem_to_hbm [thread:$0]  %s301_s24, 128, %s303_s26, [#allocation15]  }
 0x27a   :  { %316 = dma.vmem_to_hbm [thread:$0]  %s312_s28, 128, %s314_s23, [#allocation15]  }
 0x2f3   :  { %v268_v45 = vpop.f32.mrf.mxu2 }
 0x2f4   :  { %v269_v46 = vadd.f32 %v378_v44, %v268_v45 }
 0x2f6   :  { %387 = vtanh.f32 %v269_v46 }
 0x2fb   :  { %v270_v47 = vpop.f32.mrf.mxu2 }
 0x2fc   :  { %v388_v48 = vpop.eup %387 }
 0x2fd   :  { %273 = vst [vmem:[#allocation13] sm:$0xff] %v388_v48 }
 0x2fe   :  { %294 = dma.vmem_to_hbm [thread:$0]  %s290_s12, 128, %s292_s15, [#allocation4]  }
 0x2ff   :  { %613 = dma.done.wait [#allocation4], 128  }
 0x300   :  { %614 = vsyncadd [#allocation4], 4294967168 }
 0x301   :  { %615 = dma.done.wait [#allocation15], 256  }
 0x302   :  { %616 = vsyncadd [#allocation15], 4294967040 }
 0x303   :  { %329 = vsyncpa [#allocation3], 1 }
 0x304   :  { %330 = vsyncpa [#allocation6], 1 }
 0x305   :  { %331 = vsyncpa [#allocation9], 1 }
 0x306   :  { %332 = vsyncpa [#allocation12], 1 }
 0x307   :  { %333 = vsyncpa [#allocation4], 1 }
 0x308   :  { %334 = vsyncpa [#allocation15], 1 }

</bundles_post_ra>
